<compile_context>
chip_gen: v5e
topology: v5e:2x2
jax: 0.10.0
libtpu: 0.0.40
codegen_flags: <defaults>
</compile_context>

<pallas_src>
import functools

import jax
import jax.numpy as jnp
from jax.experimental import pallas as pl
from jax.experimental.pallas import tpu as pltpu


def _round_up(v, m):
    return (v + m - 1) // m * m


def _skip_linear_kernel(x_ref, w_ref, b_ref, o_ref, *, n_axis, tile_n):
    # x_ref: (tile_m, H)      full-width input rows
    # w_ref: (H, tile_n)      pre-transposed weight slab (in, out) layout
    # b_ref: (1, tile_n)      bias slab
    # o_ref: (tile_m, tile_n) output tile
    x = x_ref[...]
    # Canonical (M,K)x(K,N) contraction -> pure MXU path, f32 accumulation.
    y = jnp.dot(x, w_ref[...], preferred_element_type=jnp.float32)
    y = y + b_ref[...].astype(jnp.float32)

    if n_axis is None:
        # Output tile spans the whole hidden dim: residual is the whole x tile.
        x_res = x
    else:
        # Residual needs only this output-column slab of x (128-aligned start).
        col0 = pl.multiple_of(pl.program_id(n_axis) * tile_n, 128)
        x_res = x_ref[:, pl.ds(col0, tile_n)]

    # Single fused add + cast epilogue (the SkipConnection residual add).
    o_ref[...] = (x_res.astype(jnp.float32) + y).astype(o_ref.dtype)


def skip_connection_linear(x, weight, bias, *, tile_m=None, tile_n=None):
    """SkipConnection(Linear): out = x + (x @ W^T + b).

    x: (B, S, H); weight: (H, H) in PyTorch (out, in) layout; bias: (H,).
    Works for f32 or bf16 activations/weights (f32 accumulation either way);
    bf16 is recommended on v6e/v7x since the op is HBM-bound for typical H.
    H that is a multiple of 128 gives lane-dense, unmasked stores.
    """
    B, S, H = x.shape
    assert weight.shape == (H, H) and bias.shape == (H,)
    M = B * S
    xb = x.dtype.itemsize
    wb = weight.dtype.itemsize

    # One-time (H,H) transpose in the wrapper (amortized over the M streaming);
    # activations are NOT padded or copied.
    x2 = x.reshape(M, H)
    wt = weight.T                       # (H_in, H_out)
    b2 = bias.reshape(1, H)

    # ---- hardware query ------------------------------------------------------
    try:
        vmem_cap = pltpu.get_tpu_info().vmem_capacity_bytes
    except Exception:                   # interpret mode / older jax
        vmem_cap = 64 << 20             # v7x per-core floor; safe everywhere
    budget = int(vmem_cap * 0.6)

    # ---- tile selection ------------------------------------------------------
    lane_aligned = (H % 128 == 0)

    if tile_m is None:
        tile_m = 1024 if vmem_cap >= (100 << 20) else 512   # v5e/v6e vs v7x
    tile_m = _round_up(tile_m, 8)
    if M >= 8:
        tile_m = max(8, min(tile_m, (M // 8) * 8))   # keep block <= array rows
    else:
        tile_m = _round_up(max(M, 1), 8)

    if tile_n is None:
        tile_n = 512 if (lane_aligned and H > 1024) else H
    if lane_aligned:
        tile_n = min(_round_up(tile_n, 128), H)
        while H % tile_n != 0:
            tile_n -= 128
    else:
        tile_n = H                      # ragged H: single full-width column block

    def vmem_needed(tm, tn):
        # Double-buffered I/O tiles + compiler-managed f32 temporaries.
        return (2 * tm * H * xb                  # x tiles
                + 2 * H * tn * wb                # weight slab(s)
                + 2 * 8 * max(tn, 128) * 4       # bias (sublane padded)
                + 2 * tm * tn * xb               # out tiles
                + 2 * tm * tn * 4)               # f32 matmul acc + residual cast

    while vmem_needed(tile_m, tile_n) > budget and tile_m > 256:
        tile_m = max(256, _round_up(tile_m // 2, 8))
    # 256-wide floor for output-column tiles (v6e/v7x MXU is 256 wide); only
    # fall to 128 if nothing larger divides H.
    min_tn = 256 if (lane_aligned and H % 256 == 0 and H > 256) else 128
    while lane_aligned and vmem_needed(tile_m, tile_n) > budget and tile_n > min_tn:
        tn = max(min_tn, _round_up(tile_n // 2, 128))
        while H % tn != 0:
            tn -= 128
        if tn >= tile_n:
            break
        tile_n = tn

    num_m = pl.cdiv(M, tile_m)
    num_n = (H // tile_n) if lane_aligned else 1

    # ---- grid / specs --------------------------------------------------------
    if num_n == 1:
        tile_n = H
        grid = (num_m,)
        n_axis = None
        in_specs = [
            pl.BlockSpec((tile_m, H), lambda i: (i, 0)),   # x rows (streamed)
            pl.BlockSpec((H, H), lambda i: (0, 0)),        # weight (resident)
            pl.BlockSpec((1, H), lambda i: (0, 0)),        # bias   (resident)
        ]
        out_specs = pl.BlockSpec((tile_m, H), lambda i: (i, 0))
        dim_sem = ("parallel",)
    else:
        # Choose loop order to minimise re-streamed HBM bytes:
        #   M-outer -> weight slabs re-fetched once per M tile
        #   N-outer -> full-width x tiles re-fetched once per N slab
        w_restream = (num_m - 1) * H * H * wb
        x_restream = (num_n - 1) * M * H * xb
        if w_restream <= x_restream:
            m_axis, n_axis = 0, 1
            grid = (num_m, num_n)
        else:
            m_axis, n_axis = 1, 0
            grid = (num_n, num_m)
        in_specs = [
            pl.BlockSpec((tile_m, H), lambda *i: (i[m_axis], 0)),
            pl.BlockSpec((H, tile_n), lambda *i: (0, i[n_axis])),
            pl.BlockSpec((1, tile_n), lambda *i: (0, i[n_axis])),
        ]
        out_specs = pl.BlockSpec((tile_m, tile_n),
                                 lambda *i: (i[m_axis], i[n_axis]))
        dim_sem = ("parallel", "parallel")

    need = vmem_needed(tile_m, tile_n)
    vmem_limit = int(min(max(need * 1.5 + (2 << 20), 32 << 20), vmem_cap * 0.75))

    cost = pl.CostEstimate(
        flops=2 * M * H * H,
        transcendentals=0,
        bytes_accessed=(M * H * xb          # x read
                        + H * H * wb        # weight read
                        + H * bias.dtype.itemsize
                        + M * H * xb),      # out write
    )

    kernel = functools.partial(_skip_linear_kernel, n_axis=n_axis, tile_n=tile_n)

    out2 = pl.pallas_call(
        kernel,
        out_shape=jax.ShapeDtypeStruct((M, H), x.dtype),
        grid_spec=pltpu.PrefetchScalarGridSpec(
            num_scalar_prefetch=0,
            grid=grid,
            in_specs=in_specs,
            out_specs=out_specs,
        ),
        compiler_params=pltpu.CompilerParams(
            dimension_semantics=dim_sem,
            vmem_limit_bytes=vmem_limit,
        ),
        cost_estimate=cost,
    )(x2, wt, b2)

    return out2.reshape(B, S, H)


if __name__ == "__main__":
    key = jax.random.PRNGKey(0)
    kx, kw, kb = jax.random.split(key, 3)

    # Small shapes consistent with the encoder's SkipConnection(Linear) sublayer.
    B, S, H = 2, 8, 32
    x = jax.random.normal(kx, (B, S, H), dtype=jnp.float32)
    # PyTorch Linear parameter shapes: W (H_out, H_in), b (H_out,)
    weight = jax.random.normal(kw, (H, H), dtype=jnp.float32) * 0.1
    bias = jax.random.normal(kb, (H,), dtype=jnp.float32) * 0.1

    out = jax.block_until_ready(skip_connection_linear(x, weight, bias))
    ref = x + (jnp.einsum("bsh,oh->bso", x, weight) + bias)
    assert jnp.allclose(out, ref, atol=1e-5, rtol=1e-5), "mismatch vs reference (H=32)"

    # Second check: lane-aligned H and a ragged row count (M % tile_m != 0)
    # to exercise the pad-free cdiv grid with in-pipeline boundary masking.
    B2, S2, H2 = 2, 13, 128
    x_b = jax.random.normal(kx, (B2, S2, H2), dtype=jnp.float32)
    w_b = jax.random.normal(kw, (H2, H2), dtype=jnp.float32) * 0.05
    b_b = jax.random.normal(kb, (H2,), dtype=jnp.float32) * 0.05
    out_b = jax.block_until_ready(skip_connection_linear(x_b, w_b, b_b))
    ref_b = x_b + (jnp.einsum("bsh,oh->bso", x_b, w_b) + b_b)
    assert jnp.allclose(out_b, ref_b, atol=1e-4, rtol=1e-4), "mismatch vs reference (H=128)"

    print("KERNEL_OK")
</pallas_src>

<mosaic_0001>
module attributes {stable_mosaic.version = 11 : i64} {
  func.func @_skip_linear_kernel(%arg0: i32, %arg1: memref<16x32xf32, #tpu.memory_space<vmem>>, %arg2: memref<32x32xf32, #tpu.memory_space<vmem>>, %arg3: memref<1x32xf32, #tpu.memory_space<vmem>>, %arg4: memref<16x32xf32, #tpu.memory_space<vmem>>) attributes {dimension_semantics = [#tpu.dimension_semantics<parallel>], iteration_bounds = array<i64: 1>, scalar_prefetch = 0 : i64, scratch_operands = 0 : i64, tpu.core_type = #tpu.core_type<tc>, window_params = [{transform_indices = @transform_0, window_bounds = array<i64: 16, 32>}, {pipeline_mode = #tpu.pipeline_mode<synchronous>, transform_indices = @transform_1, window_bounds = array<i64: 32, 32>}, {pipeline_mode = #tpu.pipeline_mode<synchronous>, transform_indices = @transform_2, window_bounds = array<i64: 1, 32>}, {transform_indices = @transform_3, window_bounds = array<i64: 16, 32>}]} {
    %c0 = arith.constant 0 : index
    %c0_0 = arith.constant 0 : index
    %0 = vector.load %arg1[%c0, %c0_0] : memref<16x32xf32, #tpu.memory_space<vmem>>, vector<16x32xf32>
    %c0_1 = arith.constant 0 : index
    %c0_2 = arith.constant 0 : index
    %1 = vector.load %arg2[%c0_1, %c0_2] : memref<32x32xf32, #tpu.memory_space<vmem>>, vector<32x32xf32>
    %cst = arith.constant dense<0.000000e+00> : vector<16x32xf32>
    %2 = tpu.matmul %0, %1, %cst {dimension_numbers = #tpu.dot_dimension_numbers<[1], [0], [0], [1], [0, 0, 1, 1], [], []>} : vector<16x32xf32>, vector<32x32xf32>, vector<16x32xf32> -> vector<16x32xf32>
    %c0_3 = arith.constant 0 : index
    %c0_4 = arith.constant 0 : index
    %3 = vector.load %arg3[%c0_3, %c0_4] : memref<1x32xf32, #tpu.memory_space<vmem>>, vector<1x32xf32>
    %4 = vector.broadcast %3 : vector<1x32xf32> to vector<16x32xf32>
    %5 = arith.addf %2, %4 : vector<16x32xf32>
    %6 = arith.addf %0, %5 : vector<16x32xf32>
    %c0_5 = arith.constant 0 : index
    %c0_6 = arith.constant 0 : index
    %7 = vector.load %arg4[%c0_5, %c0_6] : memref<16x32xf32, #tpu.memory_space<vmem>>, vector<16x32xf32>
    tpu.vector_store %arg4[%c0_5, %c0_6], %6 {strides = array<i32>} : memref<16x32xf32, #tpu.memory_space<vmem>>, vector<16x32xf32>,
    return
  }
  func.func @transform_0(%arg0: i32) -> (i32, i32) {
    %c0_i32 = arith.constant 0 : i32
    %c0_i32_0 = arith.constant 0 : i32
    return %arg0, %c0_i32 : i32, i32
  }
  func.func @transform_1(%arg0: i32) -> (i32, i32) {
    %c0_i32 = arith.constant 0 : i32
    %c0_i32_0 = arith.constant 0 : i32
    %c0_i32_1 = arith.constant 0 : i32
    return %c0_i32, %c0_i32_0 : i32, i32
  }
  func.func @transform_2(%arg0: i32) -> (i32, i32) {
    %c0_i32 = arith.constant 0 : i32
    %c0_i32_0 = arith.constant 0 : i32
    %c0_i32_1 = arith.constant 0 : i32
    return %c0_i32, %c0_i32_0 : i32, i32
  }
  func.func @transform_3(%arg0: i32) -> (i32, i32) {
    %c0_i32 = arith.constant 0 : i32
    %c0_i32_0 = arith.constant 0 : i32
    return %arg0, %c0_i32 : i32, i32
  }
}

</mosaic_0001>

<bundles_post_ra>
// kernel: tpu_custom_call.1
= control target key start
LH: loop header
LB: loop body
LE: loop exit
PB: predicated region body
PF: predicated region fallthrough
CT: control target
= control target key end

     0   :  { %8 = vsyncpa [#allocation3], 0  ;;  %s251_s0 = inlined_call_operand.hbm [shape: f32[16,32], index: 0, kind: input, shape index: {}]   ;;  %s252_s1 = inlined_call_operand.hbm [shape: f32[32,32], index: 1, kind: input, shape index: {}]   ;;  %s253_s2 = inlined_call_operand.vmem [shape: f32[1,32], index: 2, kind: input, shape index: {}]   ;;  %s254_s3 = inlined_call_operand.hbm [shape: f32[16,32], index: 3, kind: output, shape index: {}]  }
   0x1   :  { %9 = vsyncpa [#allocation6], 0 }
   0x2   :  { %10 = vsyncpa [#allocation4], 0  ;;  %s15_s14 = sshll.u32 %s251_s0, 4  ;;  %s201_s15 = smov [#allocation2]   ;;  %s16_s14 = int_to_ptr.hbm [resolvable:$true] %s15_s14 }
   0x3   :  { %s17_s16 = sshll.u32 %s201_s15, 4  ;;  %s28_s19 = sshll.u32 %s252_s1, 4  ;;  %s18_s16 = int_to_ptr.vmem [resolvable:$true] %s17_s16  ;;  %s29_s19 = int_to_ptr.hbm [resolvable:$true] %s28_s19 }
   0x4   :  { %s202_s20 = smov 128   ;;  %s203_s21 = smov 8  }
   0x5   :  { %23 = dma.hbm_to_vmem [thread:$0]  %s16_s14, 256, %s18_s16, [#allocation3], %s202_s20, %s202_s20, %s203_s21  }
   0x6   :  { %s204_s22 = smov [#allocation5]  }
   0x7   :  { %s30_s23 = sshll.u32 %s204_s22, 4  ;;  %s31_s23 = int_to_ptr.vmem [resolvable:$true] %s30_s23 }
   0x8   :  { %36 = dma.hbm_to_vmem [thread:$0]  %s29_s19, 512, %s31_s23, [#allocation6], %s202_s20, %s202_s20, %s203_s21  }
   0x9   :  { %195 = dma.done.wait [#allocation3], 256  }
   0xa   :  { %196 = vsyncadd [#allocation3], 4294967040 }
   0xb   :  { %197 = dma.done.wait [#allocation6], 512  }
   0xc   :  { %198 = vsyncadd [#allocation6], 4294966784  ;;  %v52_v0 = vld [vmem:[#allocation5 + $0x18] sm:$0xff]  ;;  %v51_v1 = vld [vmem:[#allocation5 + $0x10] sm:$0xff]  ;;  %vm57_vm0 = vcmask 261120   ;;  %s205_s24 = smov [#allocation7]  }
   0xd   :  { %76 = vmatpush.msra.mxu0 %v52_v0  ;;  %113 = vmatpush.msra.mxu1 %v52_v0  ;;  %v50_v2 = vld [vmem:[#allocation5 + $0x8] sm:$0xff]  ;;  %v49_v3 = vld [vmem:[#allocation5] sm:$0xff]  ;;  %v47_v4 = vld [vmem:[#allocation2] sm:$0xff]  ;;  %s95_s25 = sshll.u32 %s205_s24, 4  ;;  %s97_s28 = sshll.u32 %s254_s3, 4  ;;  %s96_s25 = int_to_ptr.vmem [resolvable:$true] %s95_s25  ;;  %s98_s28 = int_to_ptr.hbm [resolvable:$true] %s97_s28 }
   0xe   :  { %v48_v5 = vld [vmem:[#allocation2 + $0x8] sm:$0xff]  ;;  %v122_v6 = vld [vmem:[%s253_s2] ss:$0 sm:$0xff] }
   0xf   :  { %77 = vmatpush.msra.mxu0 %v51_v1  ;;  %114 = vmatpush.msra.mxu1 %v51_v1 }
  0x11   :  { %78 = vmatpush.msra.mxu0 %v50_v2  ;;  %115 = vmatpush.msra.mxu1 %v50_v2 }
  0x13   :  { %79 = vmatpush.msra.mxu0 %v49_v3  ;;  %116 = vmatpush.msra.mxu1 %v49_v3 }
  0x14   :  { %111 = vmatmul.msk.f32.vlgmr.msra.gmra.mxu0 %vm57_vm0, %v47_v4  ;;  %112 = vmatmul.msk.f32.vlgmr.msra.gmra.mxu1 %vm57_vm0, %v48_v5 }
  0x91   :  { %v81_v7 = vpop.f32.mrf.mxu0  ;;  %v84_v8 = vpop.f32.mrf.mxu1 }
  0x92   :  { %v82_v9 = vadd.f32 %v122_v6, %v81_v7  ;;  %v85_v10 = vadd.f32 %v122_v6, %v84_v8 }
  0x94   :  { %v87_v11 = vadd.f32 %v82_v9, %v47_v4  ;;  %v88_v12 = vadd.f32 %v85_v10, %v48_v5 }
  0x96   :  { %89 = vst.msk [vmem:[#allocation7] sm:$0xff] %vm57_vm0, %v87_v11 }
  0x97   :  { %90 = vst.msk [vmem:[#allocation7 + $0x8] sm:$0xff] %vm57_vm0, %v88_v12 }
  0x98   :  { %103 = dma.vmem_to_hbm [thread:$0]  %s96_s25, 256, %s98_s28, [#allocation4], %s202_s20, %s202_s20, %s203_s21  }
  0x99   :  { %199 = dma.done.wait [#allocation4], 256  }
  0x9a   :  { %200 = vsyncadd [#allocation4], 4294967040 }
  0x9b   :  { %108 = vsyncpa [#allocation3], 1 }
  0x9c   :  { %109 = vsyncpa [#allocation6], 1 }
  0x9d   :  { %110 = vsyncpa [#allocation4], 1 }

</bundles_post_ra>
